<compile_context>
chip_gen: v6e
topology: v6e:2x2x1
jax: 0.10.0
libtpu: 0.0.40
codegen_flags: <defaults>
</compile_context>

<pallas_src>
import jax
import jax.numpy as jnp
from jax.experimental import pallas as pl
from jax.experimental.pallas import tpu as pltpu


# ----------------------------------------------------------------------------
# Kernel: one (i, j) output tile, accumulated over D-chunks (grid axis k)
# ----------------------------------------------------------------------------
def _final_emb_kernel(out0_ref, out1t_ref, o_ref, acc_ref):
    k = pl.program_id(2)

    @pl.when(k == 0)
    def _():
        acc_ref[...] = jnp.zeros_like(acc_ref)

    # Cast once at the tile boundary; elementwise math in f32 (v5e-safe).
    a = out0_ref[...].astype(jnp.float32)     # (tb, tk)  out0 rows x D-chunk
    bt = out1t_ref[...].astype(jnp.float32)   # (tk, tn)  D-chunk x out1 rows (output cols on lanes)

    # Pairwise |diff| with the output-column axis on lanes: (tb, tk, tn).
    d = jnp.abs(a[:, :, None] - bt[None, :, :])

    # Reduce the D-chunk axis (axis=1, not the lane axis) and accumulate in f32.
    acc_ref[...] += jnp.sum(d, axis=1)        # (tb, tn)

    @pl.when(k == pl.num_programs(2) - 1)
    def _():
        o_ref[...] = (-acc_ref[...]).astype(o_ref.dtype)


# ----------------------------------------------------------------------------
# Wrapper: tile selection + pallas_call
# ----------------------------------------------------------------------------
def _pick_tile(total, target, quantum):
    """Largest multiple of `quantum` that divides `total` and is <= target,
    falling back to the full dimension (always legal for BlockSpec)."""
    if total <= target:
        return total
    t = (target // quantum) * quantum
    while t >= quantum:
        if total % t == 0:
            return t
        t -= quantum
    return total


def final_emb(out0, out1):
    """out0, out1: (bsz, D) -> (bsz, bsz) float32, O[i,j] = -L1(out0[i], out1[j])."""
    B, D = out0.shape
    assert out1.shape == (B, D), "out0 / out1 must share the same (bsz, D) shape"

    tb = _pick_tile(B, 128, 8)      # out0-row tile (output sublane axis)
    tn = _pick_tile(B, 128, 128)    # out1-row / output-column tile (lane axis)
    tk = _pick_tile(D, 128, 128)    # D reduction chunk (last grid axis)

    # Present out1 transposed so output columns land on lanes inside the kernel.
    out1_t = jnp.transpose(out1)    # (D, B)

    grid = (B // tb, B // tn, D // tk)

    return pl.pallas_call(
        _final_emb_kernel,
        out_shape=jax.ShapeDtypeStruct((B, B), jnp.float32),
        grid_spec=pltpu.PrefetchScalarGridSpec(
            num_scalar_prefetch=0,
            grid=grid,
            in_specs=[
                pl.BlockSpec((tb, tk), lambda i, j, k: (i, k)),   # out0 tile
                pl.BlockSpec((tk, tn), lambda i, j, k: (k, j)),   # out1^T tile
            ],
            out_specs=pl.BlockSpec((tb, tn), lambda i, j, k: (i, j)),
            scratch_shapes=[pltpu.VMEM((tb, tn), jnp.float32)],
        ),
        compiler_params=pltpu.CompilerParams(
            dimension_semantics=("parallel", "parallel", "arbitrary")),
    )(out0, out1_t)


# ----------------------------------------------------------------------------
# Pure-JAX reference mirroring the torch ops (sanity check only)
# ----------------------------------------------------------------------------
def reference_final_emb(out0, out1):
    bsz = out0.shape[0]
    out0b = jnp.tile(out0, (bsz, 1))        # torch: out0.repeat([bsz, 1])
    out1b = jnp.repeat(out1, bsz, axis=0)   # torch: out1.repeat_interleave(bsz, 0)
    outd = out0b - out1b
    outd = jnp.sum(jnp.maximum(outd, 0.0) + jnp.maximum(-outd, 0.0), axis=1)
    return -outd.reshape(bsz, bsz).T


if __name__ == "__main__":
    key = jax.random.PRNGKey(0)
    k0, k1 = jax.random.split(key)
    bsz, D = 8, 32
    out0 = jax.random.normal(k0, (bsz, D), jnp.float32)
    out1 = jax.random.normal(k1, (bsz, D), jnp.float32)

    y = final_emb(out0, out1)
    y = jax.block_until_ready(y)

    ref = reference_final_emb(out0, out1)
    if not bool(jnp.allclose(y, ref, rtol=1e-5, atol=1e-5)):
        raise SystemExit(
            "mismatch vs reference, max abs diff = %g"
            % float(jnp.max(jnp.abs(y - ref)))
        )
    print("KERNEL_OK")
</pallas_src>

<mosaic_0001>
module attributes {stable_mosaic.version = 11 : i64} {
  func.func @_final_emb_kernel(%arg0: i32, %arg1: i32, %arg2: i32, %arg3: memref<8x32xf32, #tpu.memory_space<vmem>>, %arg4: memref<32x8xf32, #tpu.memory_space<vmem>>, %arg5: memref<8x8xf32, #tpu.memory_space<vmem>>, %arg6: memref<8x8xf32, #tpu.memory_space<vmem>>) attributes {dimension_semantics = [#tpu.dimension_semantics<parallel>, #tpu.dimension_semantics<parallel>, #tpu.dimension_semantics<arbitrary>], iteration_bounds = array<i64: 1, 1, 1>, scalar_prefetch = 0 : i64, scratch_operands = 1 : i64, tpu.core_type = #tpu.core_type<tc>, window_params = [{transform_indices = @transform_0, window_bounds = array<i64: 8, 32>}, {transform_indices = @transform_1, window_bounds = array<i64: 32, 8>}, {transform_indices = @transform_2, window_bounds = array<i64: 8, 8>}]} {
    %c0_i32 = arith.constant 0 : i32
    %0 = arith.cmpi eq, %arg2, %c0_i32 : i32
    %1 = arith.extui %0 : i1 to i32
    %c0_i32_0 = arith.constant 0 : i32
    %2 = arith.cmpi ne, %1, %c0_i32_0 : i32
    scf.if %2 {
      %cst_10 = arith.constant 0.000000e+00 : f32
      %18 = vector.broadcast %cst_10 : f32 to vector<8x8xf32>
      %c0_11 = arith.constant 0 : index
      %c0_12 = arith.constant 0 : index
      %19 = vector.load %arg6[%c0_11, %c0_12] : memref<8x8xf32, #tpu.memory_space<vmem>>, vector<8x8xf32>
      tpu.vector_store %arg6[%c0_11, %c0_12], %18 {strides = array<i32>} : memref<8x8xf32, #tpu.memory_space<vmem>>, vector<8x8xf32>,
    } else {
    }
    %c0 = arith.constant 0 : index
    %c0_1 = arith.constant 0 : index
    %3 = vector.load %arg3[%c0, %c0_1] : memref<8x32xf32, #tpu.memory_space<vmem>>, vector<8x32xf32>
    %c0_2 = arith.constant 0 : index
    %c0_3 = arith.constant 0 : index
    %4 = vector.load %arg4[%c0_2, %c0_3] : memref<32x8xf32, #tpu.memory_space<vmem>>, vector<32x8xf32>
    %5 = vector.shape_cast %3 : vector<8x32xf32> to vector<8x32x1xf32>
    %6 = vector.shape_cast %4 : vector<32x8xf32> to vector<1x32x8xf32>
    %7 = vector.broadcast %5 : vector<8x32x1xf32> to vector<8x32x8xf32>
    %8 = vector.broadcast %6 : vector<1x32x8xf32> to vector<8x32x8xf32>
    %9 = arith.subf %7, %8 : vector<8x32x8xf32>
    %10 = math.absf %9 : vector<8x32x8xf32>
    %c0_4 = arith.constant 0 : index
    %c0_5 = arith.constant 0 : index
    %11 = vector.load %arg6[%c0_4, %c0_5] : memref<8x8xf32, #tpu.memory_space<vmem>>, vector<8x8xf32>
    %cst = arith.constant dense<0.000000e+00> : vector<8x8xf32>
    %12 = vector.multi_reduction <add>, %10, %cst [1] : vector<8x32x8xf32> to vector<8x8xf32>
    %13 = arith.addf %11, %12 : vector<8x8xf32>
    %c0_6 = arith.constant 0 : index
    %c0_7 = arith.constant 0 : index
    %14 = vector.load %arg6[%c0_6, %c0_7] : memref<8x8xf32, #tpu.memory_space<vmem>>, vector<8x8xf32>
    tpu.vector_store %arg6[%c0_6, %c0_7], %13 {strides = array<i32>} : memref<8x8xf32, #tpu.memory_space<vmem>>, vector<8x8xf32>,
    %c0_i32_8 = arith.constant 0 : i32
    %15 = arith.cmpi eq, %arg2, %c0_i32_8 : i32
    %16 = arith.extui %15 : i1 to i32
    %c0_i32_9 = arith.constant 0 : i32
    %17 = arith.cmpi ne, %16, %c0_i32_9 : i32
    scf.if %17 {
      %c0_10 = arith.constant 0 : index
      %c0_11 = arith.constant 0 : index
      %18 = vector.load %arg6[%c0_10, %c0_11] : memref<8x8xf32, #tpu.memory_space<vmem>>, vector<8x8xf32>
      %cst_12 = arith.constant 0.000000e+00 : f32
      %19 = vector.broadcast %cst_12 : f32 to vector<8x8xf32>
      %20 = arith.subf %19, %18 : vector<8x8xf32>
      %c0_13 = arith.constant 0 : index
      %c0_14 = arith.constant 0 : index
      %21 = vector.load %arg5[%c0_13, %c0_14] : memref<8x8xf32, #tpu.memory_space<vmem>>, vector<8x8xf32>
      tpu.vector_store %arg5[%c0_13, %c0_14], %20 {strides = array<i32>} : memref<8x8xf32, #tpu.memory_space<vmem>>, vector<8x8xf32>,
    } else {
    }
    return
  }
  func.func @transform_0(%arg0: i32, %arg1: i32, %arg2: i32) -> (i32, i32) {
    %c0_i32 = arith.constant 0 : i32
    return %arg0, %arg2 : i32, i32
  }
  func.func @transform_1(%arg0: i32, %arg1: i32, %arg2: i32) -> (i32, i32) {
    %c0_i32 = arith.constant 0 : i32
    return %arg2, %arg1 : i32, i32
  }
  func.func @transform_2(%arg0: i32, %arg1: i32, %arg2: i32) -> (i32, i32) {
    %c0_i32 = arith.constant 0 : i32
    return %arg0, %arg1 : i32, i32
  }
}

</mosaic_0001>

<bundles_post_ra>
// kernel: tpu_custom_call.1
= control target key start
LH: loop header
LB: loop body
LE: loop exit
PB: predicated region body
PF: predicated region fallthrough
CT: control target
= control target key end

     0   :  { %v23_v0 = vlaneseq  ;;  %s531_s0 = inlined_call_operand.vmem [shape: f32[8,32], index: 0, kind: input, shape index: {}]   ;;  %s532_s1 = inlined_call_operand.vmem [shape: f32[32,8], index: 1, kind: input, shape index: {}]   ;;  %s533_s2 = inlined_call_operand.hbm [shape: f32[8,8], index: 2, kind: output, shape index: {}]  }
   0x1   :  { %7 = vsyncpa [#allocation4], 0  ;;  %v18_v2 = vld [vmem:[%s531_s0] sm:$0xff]  ;;  %vm16_vm0 = vcmask 64512   ;;  %v414_v19 = vmov 0.0   ;;  %v440_v32 = vld [vmem:[%s532_s1 + $0x8] sm:$0xff] }
   0x2   :  { %v24_v1 = vshrl.u32 %v23_v0, 7  ;;  %17 = vst.msk [vmem:[#allocation2] sm:$0xff] %vm16_vm0, %v414_v19  ;;  %v445_v33 = vld [vmem:[%s532_s1] sm:$0xff]  ;;  %v450_v34 = vld [vmem:[%s532_s1 + $0x10] sm:$0xff]  ;;  %v459_v41 = vld [vmem:[%s532_s1 + $0x18] sm:$0xff]  ;;  %vm353_vm1 = vcmask 1041409  }
   0x3   :  { %vm355_vm2 = vcmask 1042434   ;;  %vm357_vm3 = vcmask 1043459   ;;  %vm359_vm4 = vcmask 1044484   ;;  %vm361_vm5 = vcmask 1045509   ;;  %s415_s1 = smov [#allocation3]  }
   0x4   :  { %v44_v3 = vsub.s32 1, %v24_v1  ;;  %v25_v4 = vsub.s32 0, %v24_v1  ;;  %v63_v7 = vsub.s32 2, %v24_v1  ;;  %v82_v9 = vsub.s32 3, %v24_v1  ;;  %s382_s18 = sshll.u32 %s415_s1, 4  ;;  %s383_s18 = int_to_ptr.vmem [resolvable:$true] %s382_s18 }
   0x5   :  { %v101_v11 = vsub.s32 4, %v24_v1  ;;  %v120_v13 = vsub.s32 5, %v24_v1  ;;  %v139_v15 = vsub.s32 6, %v24_v1  ;;  %v158_v17 = vsub.s32 7, %v24_v1  ;;  %s392_s19 = scalar_lea.vmem %s383_s18, 128  ;;  %p397_p1 = scmp.lt.s32.totalorder %s383_s18, %s383_s18 }
   0x6   :  { %v45_v5 = vrot.slane %v18_v2, %v44_v3  ;;  %v26_v6 = vrot.slane %v18_v2, %v25_v4  ;;  %v64_v8 = vrot.slane %v18_v2, %v63_v7  ;;  %v83_v10 = vrot.slane %v18_v2, %v82_v9  ;;  %p393_p0 = scmp.ne.s32.totalorder %s383_s18, %s392_s19  ;;  %p398_p2 = scmp.lt.s32.totalorder %s392_s19, %s392_s19 }
   0x7   :  { %v102_v12 = vrot.slane %v18_v2, %v101_v11  ;;  %v121_v14 = vrot.slane %v18_v2, %v120_v13  ;;  %v140_v16 = vrot.slane %v18_v2, %v139_v15  ;;  %v159_v18 = vrot.slane %v18_v2, %v158_v17 }
   0x8   :  { %47 = vbcast.lane.b32.xlu1 %v45_v5, 256  ;;  %28 = vbcast.lane.b32.xlu0 %v26_v6, 256  ;;  %vm363_vm6 = vcmask 1046534   ;;  %vm365_vm7 = vcmask 1047559   ;;  %p399_p3 = por %p398_p2, %p397_p1 }
   0xa   :  { %p400_p4 = pnand %p399_p3, %p393_p0 }
   0xc   :  { %51 = vbcast.lane.b32.xlu1 %v45_v5, 264  ;;  %32 = vbcast.lane.b32.xlu0 %v26_v6, 264 }
  0x10   :  { %70 = vbcast.lane.b32.xlu1 %v64_v8, 264  ;;  %66 = vbcast.lane.b32.xlu0 %v64_v8, 256 }
  0x14   :  { %55 = vbcast.lane.b32.xlu1 %v45_v5, 272  ;;  %36 = vbcast.lane.b32.xlu0 %v26_v6, 272 }
  0x18   :  { %89 = vbcast.lane.b32.xlu1 %v83_v10, 264  ;;  %85 = vbcast.lane.b32.xlu0 %v83_v10, 256 }
  0x1c   :  { %104 = vbcast.lane.b32.xlu1 %v102_v12, 256  ;;  %74 = vbcast.lane.b32.xlu0 %v64_v8, 272 }
  0x20   :  { %40 = vbcast.lane.b32.xlu1 %v26_v6, 280  ;;  %108 = vbcast.lane.b32.xlu0 %v102_v12, 264 }
  0x24   :  { %93 = vbcast.lane.b32.xlu1 %v83_v10, 272  ;;  %59 = vbcast.lane.b32.xlu0 %v45_v5, 280 }
  0x28   :  { %127 = vbcast.lane.b32.xlu1 %v121_v14, 264  ;;  %123 = vbcast.lane.b32.xlu0 %v121_v14, 256 }
  0x2c   :  { %112 = vbcast.lane.b32.xlu1 %v102_v12, 272  ;;  %78 = vbcast.lane.b32.xlu0 %v64_v8, 280 }
  0x30   :  { %146 = vbcast.lane.b32.xlu1 %v140_v16, 264  ;;  %142 = vbcast.lane.b32.xlu0 %v140_v16, 256 }
  0x34   :  { %131 = vbcast.lane.b32.xlu1 %v121_v14, 272  ;;  %97 = vbcast.lane.b32.xlu0 %v83_v10, 280 }
  0x38   :  { %165 = vbcast.lane.b32.xlu1 %v159_v18, 264  ;;  %161 = vbcast.lane.b32.xlu0 %v159_v18, 256 }
  0x3c   :  { %150 = vbcast.lane.b32.xlu1 %v140_v16, 272  ;;  %116 = vbcast.lane.b32.xlu0 %v102_v12, 280 }
  0x40   :  { %169 = vbcast.lane.b32.xlu1 %v159_v18, 272  ;;  %135 = vbcast.lane.b32.xlu0 %v121_v14, 280 }
  0x44   :  { %173 = vbcast.lane.b32.xlu1 %v159_v18, 280  ;;  %154 = vbcast.lane.b32.xlu0 %v140_v16, 280 }
  0x7a   :  { %v48_v20 = vpop.permute.xlu1 %47  ;;  %v29_v21 = vpop.permute.xlu0 %28 }
  0x7b   :  { %v179_v38 = vsub.f32 %v48_v20, %v445_v33  ;;  %v175_v39 = vsub.f32 %v29_v21, %v445_v33 }
  0x7d   :  { %v211_v50 = vand.u32 2147483647, %v179_v38  ;;  %v207_v51 = vand.u32 2147483647, %v175_v39 }
  0x7e   :  { %v52_v22 = vpop.permute.xlu1 %51  ;;  %v33_v23 = vpop.permute.xlu0 %32 }
  0x7f   :  { %v176_v37 = vsub.f32 %v33_v23, %v440_v32  ;;  %v180_v42 = vsub.f32 %v52_v22, %v440_v32  ;;  %v254_v0 = vsel %vm16_vm0, %v211_v50, 0.0  ;;  %v241_v1 = vsel %vm16_vm0, %v207_v51, 0.0 }
  0x81   :  { %v208_v47 = vand.u32 2147483647, %v176_v37  ;;  %v212_v53 = vand.u32 2147483647, %v180_v42 }
  0x82   :  { %v71_v24 = vpop.permute.xlu1 %70  ;;  %v67_v25 = vpop.permute.xlu0 %66 }
  0x83   :  { %v184_v43 = vsub.f32 %v71_v24, %v440_v32  ;;  %v183_v44 = vsub.f32 %v67_v25, %v445_v33  ;;  %v242_v58 = vsel %vm16_vm0, %v208_v47, 0.0  ;;  %v255_v4 = vsel %vm16_vm0, %v212_v53, 0.0 }
  0x84   :  { %v243_v5 = vadd.f32 %v242_v58, %v241_v1  ;;  %v256_v22 = vadd.f32 %v255_v4, %v254_v0 }
  0x85   :  { %v216_v54 = vand.u32 2147483647, %v184_v43  ;;  %v215_v55 = vand.u32 2147483647, %v183_v44 }
  0x86   :  { %v56_v26 = vpop.permute.xlu1 %55  ;;  %v37_v27 = vpop.permute.xlu0 %36 }
  0x87   :  { %v177_v40 = vsub.f32 %v37_v27, %v450_v34  ;;  %v181_v48 = vsub.f32 %v56_v26, %v450_v34  ;;  %v268_v6 = vsel %vm16_vm0, %v216_v54, 0.0  ;;  %v267_v7 = vsel %vm16_vm0, %v215_v55, 0.0 }
  0x89   :  { %v209_v52 = vand.u32 2147483647, %v177_v40  ;;  %v213_v61 = vand.u32 2147483647, %v181_v48 }
  0x8a   :  { %v90_v28 = vpop.permute.xlu1 %89  ;;  %v86_v29 = vpop.permute.xlu0 %85 }
  0x8b   :  { %v188_v62 = vsub.f32 %v90_v28, %v440_v32  ;;  %v244_v2 = vsel %vm16_vm0, %v209_v52, 0.0  ;;  %v187_v3 = vsub.f32 %v86_v29, %v445_v33  ;;  %v257_v14 = vsel %vm16_vm0, %v213_v61, 0.0 }
  0x8c   :  { %v245_v15 = vadd.f32 %v244_v2, %v243_v5  ;;  %v269_v29 = vadd.f32 %v268_v6, %v267_v7 }
  0x8d   :  { %v220_v16 = vand.u32 2147483647, %v188_v62  ;;  %v219_v18 = vand.u32 2147483647, %v187_v3 }
  0x8e   :  { %v435_v30 = vpop.permute.xlu1 %104  ;;  %v75_v31 = vpop.permute.xlu0 %74 }
  0x8f   :  { %v185_v59 = vsub.f32 %v75_v31, %v450_v34  ;;  %v191_v19 = vsub.f32 %v435_v30, %v445_v33  ;;  %v258_v31 = vadd.f32 %v257_v14, %v256_v22  ;;  %v280_v37 = vsel %vm16_vm0, %v219_v18, 0.0 }
  0x91   :  { %v217_v10 = vand.u32 2147483647, %v185_v59  ;;  %v223_v38 = vand.u32 2147483647, %v191_v19 }
  0x92   :  { %v41_v35 = vpop.permute.xlu1 %40  ;;  %v109_v36 = vpop.permute.xlu0 %108 }
  0x93   :  { %v178_v49 = vsub.f32 %v41_v35, %v459_v41  ;;  %v192_v20 = vsub.f32 %v109_v36, %v440_v32  ;;  %v270_v25 = vsel %vm16_vm0, %v217_v10, 0.0  ;;  %v281_v35 = vsel %vm16_vm0, %v220_v16, 0.0 }
  0x94   :  { %v271_v39 = vadd.f32 %v270_v25, %v269_v29  ;;  %v282_v50 = vadd.f32 %v281_v35, %v280_v37  ;;  %v293_v52 = vsel %vm16_vm0, %v223_v38, 0.0 }
  0x95   :  { %v210_v63 = vand.u32 2147483647, %v178_v49  ;;  %v224_v30 = vand.u32 2147483647, %v192_v20 }
  0x96   :  { %v94_v45 = vpop.permute.xlu1 %93  ;;  %v60_v46 = vpop.permute.xlu0 %59 }
  0x97   :  { %v182_v60 = vsub.f32 %v60_v46, %v459_v41  ;;  %v189_v11 = vsub.f32 %v94_v45, %v450_v34  ;;  %v246_v17 = vsel %vm16_vm0, %v210_v63, 0.0  ;;  %v294_v53 = vsel %vm16_vm0, %v224_v30, 0.0 }
  0x98   :  { %v247_v26 = vadd.f32 %v246_v17, %v245_v15  ;;  %v295_v5 = vadd.f32 %v294_v53, %v293_v52 }
  0x99   :  { %v214_v12 = vand.u32 2147483647, %v182_v60  ;;  %v221_v27 = vand.u32 2147483647, %v189_v11 }
  0x9a   :  { %v128_v56 = vpop.permute.xlu1 %127  ;;  %v124_v57 = vpop.permute.xlu0 %123  ;;  %v248_v46 = vrot.slane %v247_v26, 4 }
  0x9b   :  { %v259_v28 = vsel %vm16_vm0, %v214_v12, 0.0  ;;  %v196_v42 = vsub.f32 %v128_v56, %v440_v32  ;;  %v195_v43 = vsub.f32 %v124_v57, %v445_v33  ;;  %v283_v47 = vsel %vm16_vm0, %v221_v27, 0.0 }
  0x9c   :  { %v260_v40 = vadd.f32 %v259_v28, %v258_v31  ;;  %v284_v55 = vadd.f32 %v283_v47, %v282_v50  ;;  %v496_v61 = vadd.f32 %v248_v46, %v247_v26 }
  0x9d   :  { %v228_v58 = vand.u32 2147483647, %v196_v42  ;;  %v227_v57 = vand.u32 2147483647, %v195_v43 }
  0x9e   :  { %v113_v8 = vpop.permute.xlu1 %112  ;;  %v79_v9 = vpop.permute.xlu0 %78  ;;  %v261_v56 = vrot.slane %v260_v40, 4  ;;  %v250_v18 = vrot.slane %v496_v61, 2 }
  0x9f   :  { %v186_v13 = vsub.f32 %v79_v9, %v459_v41  ;;  %v193_v48 = vsub.f32 %v113_v8, %v450_v34  ;;  %v307_v9 = vsel %vm16_vm0, %v228_v58, 0.0  ;;  %v306_v10 = vsel %vm16_vm0, %v227_v57, 0.0 }
  0xa0   :  { %v262_v8 = vadd.f32 %v261_v56, %v260_v40  ;;  %v308_v20 = vadd.f32 %v307_v9, %v306_v10 }
  0xa1   :  { %v218_v21 = vand.u32 2147483647, %v186_v13  ;;  %v225_v62 = vand.u32 2147483647, %v193_v48 }
  0xa2   :  { %v147_v23 = vpop.permute.xlu1 %146  ;;  %v143_v24 = vpop.permute.xlu0 %142 }
  0xa3   :  { %v272_v36 = vsel %vm16_vm0, %v218_v21, 0.0  ;;  %v200_v2 = vsub.f32 %v147_v23, %v440_v32  ;;  %v199_v3 = vsub.f32 %v143_v24, %v445_v33  ;;  %v296_v14 = vsel %vm16_vm0, %v225_v62, 0.0 }
  0xa4   :  { %v273_v51 = vadd.f32 %v272_v36, %v271_v39  ;;  %v263_v24 = vrot.slane %v262_v8, 2  ;;  %v297_v25 = vadd.f32 %v296_v14, %v295_v5 }
  0xa5   :  { %v232_v19 = vand.u32 2147483647, %v200_v2 }
  0xa6   :  { %v132_v44 = vpop.permute.xlu1 %131  ;;  %v98_v45 = vpop.permute.xlu0 %97  ;;  %v274_v1 = vrot.slane %v273_v51, 4 }
  0xa7   :  { %v190_v49 = vsub.f32 %v98_v45, %v459_v41  ;;  %v197_v63 = vsub.f32 %v132_v44, %v450_v34  ;;  %v320_v36 = vsel %vm16_vm0, %v232_v19, 0.0 }
  0xa9   :  { %v222_v54 = vand.u32 2147483647, %v190_v49  ;;  %v229_v15 = vand.u32 2147483647, %v197_v63 }
  0xaa   :  { %v166_v59 = vpop.permute.xlu1 %165  ;;  %v162_v60 = vpop.permute.xlu0 %161 }
  0xab   :  { %v285_v0 = vsel %vm16_vm0, %v222_v54, 0.0  ;;  %v204_v6 = vsub.f32 %v166_v59, %v440_v32  ;;  %v203_v7 = vsub.f32 %v162_v60, %v445_v33  ;;  %v275_v32 = vadd.f32 %v274_v1, %v273_v51 }
  0xac   :  { %v286_v4 = vadd.f32 %v285_v0, %v284_v55  ;;  %v231_v33 = vand.u32 2147483647, %v199_v3  ;;  %v309_v31 = vsel %vm16_vm0, %v229_v15, 0.0  ;;  %v264_v59 = vadd.f32 %v263_v24, %v262_v8 }
  0xad   :  { %v236_v21 = vand.u32 2147483647, %v204_v6  ;;  %v235_v22 = vand.u32 2147483647, %v203_v7  ;;  %v276_v30 = vrot.slane %v275_v32, 2  ;;  %v310_v46 = vadd.f32 %v309_v31, %v308_v20 }
  0xae   :  { %v287_v11 = vrot.slane %v286_v4, 4  ;;  %v151_v12 = vpop.permute.xlu1 %150  ;;  %v117_v13 = vpop.permute.xlu0 %116  ;;  %v319_v39 = vsel %vm16_vm0, %v231_v33, 0.0 }
  0xaf   :  { %v201_v16 = vsub.f32 %v151_v12, %v450_v34  ;;  %v194_v17 = vsub.f32 %v117_v13, %v459_v41  ;;  %v333_v42 = vsel %vm16_vm0, %v236_v21, 0.0  ;;  %v332_v43 = vsel %vm16_vm0, %v235_v22, 0.0 }
  0xb0   :  { %v288_v26 = vadd.f32 %v287_v11, %v286_v4  ;;  %v321_v55 = vadd.f32 %v320_v36, %v319_v39  ;;  %v334_v56 = vadd.f32 %v333_v42, %v332_v43  ;;  %v277_v60 = vadd.f32 %v276_v30, %v275_v32  ;;  %v239_v43 = vld [vmem:[#allocation2] sm:$0xff] }
  0xb1   :  { %v226_v23 = vand.u32 2147483647, %v194_v17  ;;  %v233_v27 = vand.u32 2147483647, %v201_v16  ;;  %v251_v4 = vadd.f32 %v250_v18, %v496_v61  ;;  %v265_v12 = vrot.slane %v264_v59, 1 }
  0xb2   :  { %v170_v28 = vpop.permute.xlu1 %169  ;;  %v136_v29 = vpop.permute.xlu0 %135  ;;  %v289_v47 = vrot.slane %v288_v26, 2  ;;  %v278_v8 = vrot.slane %v277_v60, 1 }
  0xb3   :  { %v298_v35 = vsel %vm16_vm0, %v226_v23, 0.0  ;;  %v205_v37 = vsub.f32 %v170_v28, %v450_v34  ;;  %v198_v38 = vsub.f32 %v136_v29, %v459_v41  ;;  %v322_v48 = vsel %vm16_vm0, %v233_v27, 0.0 }
  0xb4   :  { %v299_v40 = vadd.f32 %v298_v35, %v297_v25  ;;  %v323_v0 = vadd.f32 %v322_v48, %v321_v55  ;;  %v290_v5 = vadd.f32 %v289_v47, %v288_v26  ;;  %v252_v16 = vrot.slane %v251_v4, 1 }
  0xb5   :  { %v237_v44 = vand.u32 2147483647, %v205_v37  ;;  %v230_v45 = vand.u32 2147483647, %v198_v38  ;;  %v266_v18 = vadd.f32 %v265_v12, %v264_v59  ;;  %v279_v20 = vadd.f32 %v278_v8, %v277_v60 }
  0xb6   :  { %v300_v49 = vrot.slane %v299_v40, 4  ;;  %v174_v34 = vpop.permute.xlu1 %173  ;;  %v155_v50 = vpop.permute.xlu0 %154  ;;  %v291_v17 = vrot.slane %v290_v5, 1  ;;  %v253_v24 = vadd.f32 %v252_v16, %v251_v4 }
  0xb7   :  { %v335_v51 = vsel %vm16_vm0, %v237_v44, 0.0  ;;  %v311_v52 = vsel %vm16_vm0, %v230_v45, 0.0  ;;  %v206_v53 = vsub.f32 %v174_v34, %v459_v41  ;;  %v202_v54 = vsub.f32 %v155_v50, %v459_v41 }
  0xb8   :  { %v301_v58 = vadd.f32 %v300_v49, %v299_v40  ;;  %v312_v57 = vadd.f32 %v311_v52, %v310_v46  ;;  %v336_v2 = vadd.f32 %v335_v51, %v334_v56  ;;  %v292_v25 = vadd.f32 %v291_v17, %v290_v5 }
  0xb9   :  { %v238_v62 = vand.u32 2147483647, %v206_v53  ;;  %v234_v63 = vand.u32 2147483647, %v202_v54  ;;  %v354_v29 = vsel %vm353_vm1, %v266_v18, %v253_v24 }
  0xba   :  { %v302_v1 = vrot.slane %v301_v58, 2  ;;  %v313_v3 = vrot.slane %v312_v57, 4  ;;  %v356_v35 = vsel %vm355_vm2, %v279_v20, %v354_v29 }
  0xbb   :  { %v337_v6 = vsel %vm16_vm0, %v238_v62, 0.0  ;;  %v324_v7 = vsel %vm16_vm0, %v234_v63, 0.0  ;;  %v358_v30 = vsel %vm357_vm3, %v292_v25, %v356_v35 }
  0xbc   :  { %v303_v41 = vadd.f32 %v302_v1, %v301_v58  ;;  %v314_v9 = vadd.f32 %v313_v3, %v312_v57  ;;  %v338_v10 = vadd.f32 %v337_v6, %v336_v2  ;;  %v325_v11 = vadd.f32 %v324_v7, %v323_v0 }
  0xbe   :  { %v315_v13 = vrot.slane %v314_v9, 2  ;;  %v339_v14 = vrot.slane %v338_v10, 4  ;;  %v326_v15 = vrot.slane %v325_v11, 4  ;;  %v304_v32 = vrot.slane %v303_v41, 1 }
  0xc0   :  { %v316_v19 = vadd.f32 %v315_v13, %v314_v9  ;;  %v340_v33 = vadd.f32 %v339_v14, %v338_v10  ;;  %v327_v61 = vadd.f32 %v326_v15, %v325_v11  ;;  %v305_v26 = vadd.f32 %v304_v32, %v303_v41 }
  0xc2   :  { %v317_v21 = vrot.slane %v316_v19, 1  ;;  %v341_v22 = vrot.slane %v340_v33, 2  ;;  %v328_v23 = vrot.slane %v327_v61, 2  ;;  %v360_v36 = vsel %vm359_vm4, %v305_v26, %v358_v30 }
  0xc4   :  { %v342_v27 = vadd.f32 %v341_v22, %v340_v33  ;;  %v329_v28 = vadd.f32 %v328_v23, %v327_v61  ;;  %v318_v31 = vadd.f32 %v317_v21, %v316_v19 }
  0xc6   :  { %v343_v37 = vrot.slane %v342_v27, 1  ;;  %v330_v38 = vrot.slane %v329_v28, 1  ;;  %v362_v42 = vsel %vm361_vm5, %v318_v31, %v360_v36 }
  0xc8   :  { %v344_v39 = vadd.f32 %v343_v37, %v342_v27  ;;  %v331_v40 = vadd.f32 %v330_v38, %v329_v28 }
  0xca   :  { %v364_v44 = vsel %vm363_vm6, %v331_v40, %v362_v42 }
  0xcb   :  { %v366_v45 = vsel %vm365_vm7, %v344_v39, %v364_v44 }
  0xcc   :  { %v368_v46 = vadd.f32 %v366_v45, %v239_v43 }
  0xce   :  { %369 = vst.msk [vmem:[#allocation2] sm:$0xff] %vm16_vm0, %v368_v46 }
  0xd5   :  { %v373_v47 = vld [vmem:[#allocation2] sm:$0xff] }
  0xd6   :  { %v374_v48 = vsub.f32 0.0, %v373_v47 }
  0xd8   :  { %375 = vst.msk [vmem:[#allocation3] sm:$0xff] %vm16_vm0, %v374_v48 }
  0xd9   :  { %403 = shalt.err (!%p400_p4)
}
  0xda   :  { %385 = dma.vmem_to_hbm [thread:$0]  %s383_s18, 128, %s533_s2, [#allocation4]  }
  0xdb   :  { %412 = dma.done.wait [#allocation4], 128  }
  0xdc   :  { %413 = vsyncadd [#allocation4], 4294967168 }
  0xdd   :  { %389 = vsyncpa [#allocation4], 1 }

</bundles_post_ra>
